<compile_context>
chip_gen: v7x
topology: tpu7x:2x2x1
jax: 0.10.0
libtpu: 0.0.40
codegen_flags: <defaults>
</compile_context>

<pallas_src>
import jax
import jax.numpy as jnp
from jax.experimental import pallas as pl
from jax.experimental.pallas import tpu as pltpu


def _round_up(x: int, m: int) -> int:
    return ((x + m - 1) // m) * m


def _cdiv(x: int, m: int) -> int:
    return (x + m - 1) // m


def make_nerfw_loss(coef: float = 1.0, lambda_u: float = 0.01,
                    tile_n: int = 32768):
    """Returns nerfw_loss(inputs, targets, depth_targets) -> dict of 5 scalars."""
    assert tile_n % 1024 == 0, "tile_n must be a multiple of 1024 (8 sublanes x 128 lanes)"
    COEF = float(coef)
    LAMBDA_U = float(lambda_u)

    def _build(n_rows: int, s2: int, tile: int, n_tiles: int):
        tl = tile // 8  # lane extent per step (multiple of 128)

        def kernel(pk_ref, sig_ref, out_ref, acc):
            i = pl.program_id(0)

            @pl.when(i == 0)
            def _init():
                acc[...] = jnp.zeros_like(acc)

            # Packed rows: 0-2 rgb_coarse, 3-5 rgb_fine, 6-8 targets,
            #              9 beta, 10 render_depth, 11 depth_var, 12 depth_tgt.
            rgb_c = pk_ref[0:3].astype(jnp.float32)       # (3, 8, tl)
            rgb_f = pk_ref[3:6].astype(jnp.float32)       # (3, 8, tl)
            tgt = pk_ref[6:9].astype(jnp.float32)         # (3, 8, tl)
            beta = pk_ref[9].astype(jnp.float32)          # (8, tl)
            d = pk_ref[10].astype(jnp.float32)
            var = pk_ref[11].astype(jnp.float32)
            d_tgt = pk_ref[12].astype(jnp.float32)

            # coarse color: sum_channels (rgb_coarse - target)^2, one dense plane.
            dc = rgb_c - tgt
            acc[0] += jnp.sum(dc * dc, axis=0)

            # fine color: sum_channels (rgb_fine - target)^2 / (2 beta^2)
            b2 = beta * beta
            r = pl.reciprocal(b2, approx=True)
            r = r * (2.0 - b2 * r)                        # Newton step -> f32 accuracy
            df = rgb_f - tgt
            acc[1] += jnp.sum(df * df, axis=0) * (0.5 * r)

            # beta: sum log(beta)
            acc[2] += jnp.log(beta)

            # depth (masked): sum |d - d_gt| * rsqrt(var); count of valid rays.
            mask = d_tgt > 0.0
            term = jnp.abs(d - d_tgt) * jax.lax.rsqrt(var)
            acc[3] += jnp.where(mask, term, 0.0)
            acc[4] += mask.astype(jnp.float32)

            # sigma: sum transient_sigmas (collapse the s2 planes per step).
            acc[5] += jnp.sum(sig_ref[...].astype(jnp.float32), axis=0)

            @pl.when(i == pl.num_programs(0) - 1)
            def _finalize():
                n = jnp.float32(n_rows)
                n_rgb = jnp.float32(n_rows * 3)
                n_sig = jnp.float32(n_rows * s2)
                sum_c = jnp.sum(acc[0])
                sum_f = jnp.sum(acc[1])
                sum_b = jnp.sum(acc[2])
                sum_d = jnp.sum(acc[3])
                sum_n = jnp.sum(acc[4])
                sum_s = jnp.sum(acc[5])
                out_ref[0] = COEF * 0.5 * sum_c / n_rgb               # c_l
                out_ref[1] = COEF * sum_f / n_rgb                     # f_l
                out_ref[2] = COEF * (3.0 + sum_b / n)                 # b_l
                out_ref[3] = COEF * LAMBDA_U * sum_s / n_sig          # s_l
                out_ref[4] = COEF * 0.09 * sum_d / sum_n              # d_l

        col_map = lambda i: (0, 0, i)
        return pl.pallas_call(
            kernel,
            out_shape=jax.ShapeDtypeStruct((5,), jnp.float32),
            grid_spec=pltpu.PrefetchScalarGridSpec(
                num_scalar_prefetch=0,
                grid=(n_tiles,),
                in_specs=[
                    pl.BlockSpec((16, 8, tl), col_map),   # packed rgb + per-ray scalars
                    pl.BlockSpec((s2, 8, tl), col_map),   # transient_sigmas (folded)
                ],
                out_specs=pl.BlockSpec(memory_space=pltpu.MemorySpace.SMEM),
                scratch_shapes=[
                    pltpu.VMEM((6, 8, tl), jnp.float32),  # fused accumulators
                ],
            ),
            compiler_params=pltpu.CompilerParams(
                dimension_semantics=("arbitrary",),
                vmem_limit_bytes=32 << 20,
            ),
        )

    def nerfw_loss(inputs, targets, depth_targets):
        n = targets.shape[0]
        s2 = inputs["transient_sigmas"].shape[1]

        # VMEM-aware tile clamp: double-buffered inputs + accumulators (f32).
        bytes_per_ray = 4 * (2 * (16 + s2) + 6)
        max_tile = max(1024, ((24 << 20) // bytes_per_ray) // 1024 * 1024)
        eff_tile = min(tile_n, max_tile)

        # Tile selection: never pad N by a whole extra tile (pad < 1024/step).
        n_pad1 = _round_up(n, 1024)
        n_tiles = _cdiv(n_pad1, eff_tile)
        tile = _round_up(_cdiv(n_pad1, n_tiles), 1024)
        n_pad = tile * n_tiles
        pad = n_pad - n

        # Pack rgb_coarse | rgb_fine | targets | beta | depth | var | d_tgt
        # into one (n, 13) slab (dtype promotion keeps native input dtype).
        beta = inputs["beta"].reshape(n, 1)
        depth = inputs["render_depth"].reshape(n, 1)
        var = inputs["render_depth_var"].reshape(n, 1)
        d_tgt = jnp.reshape(jnp.squeeze(depth_targets), (n, 1))
        cols = jnp.concatenate(
            [inputs["rgb_coarse"], inputs["rgb_fine"], targets,
             beta, depth, var, d_tgt], axis=1)                       # (n, 13)

        if pad:
            # Sentinel rays contribute exactly zero to every partial sum:
            # rgb=tgt=0, beta=1 (log=0), depth=0, var=1, d_tgt=0 (masked).
            sentinel = jnp.array([0.0] * 9 + [1.0, 0.0, 1.0, 0.0],
                                 dtype=cols.dtype)
            cols = jnp.concatenate(
                [cols, jnp.broadcast_to(sentinel, (pad, 13))], axis=0)
        cols = jnp.pad(cols, ((0, 0), (0, 3)))                       # (n_pad, 16)
        # Channel-major + ray axis folded into (8 sublanes, n_pad/8 lanes).
        packed = cols.T.reshape(16, 8, n_pad // 8)

        sig = inputs["transient_sigmas"]
        if pad:
            sig = jnp.pad(sig, ((0, pad), (0, 0)))                   # zeros: no effect
        sig_t = sig.T.reshape(s2, 8, n_pad // 8)

        out = _build(n, s2, tile, n_tiles)(packed, sig_t)
        return {"c_l": out[0], "f_l": out[1], "b_l": out[2],
                "s_l": out[3], "d_l": out[4]}

    return nerfw_loss


def nerfw_loss_ref(inputs, targets, depth_targets, coef=1.0, lambda_u=0.01):
    """Pure-JAX reference matching the PyTorch forward."""
    ret = {}
    ret["c_l"] = 0.5 * jnp.mean((inputs["rgb_coarse"] - targets) ** 2)
    d_tgt = jnp.squeeze(depth_targets)
    mask = d_tgt > 0
    term = jnp.abs(inputs["render_depth"] - d_tgt) / jnp.sqrt(inputs["render_depth_var"])
    ret["d_l"] = 0.09 * jnp.sum(jnp.where(mask, term, 0.0)) / jnp.sum(mask)
    beta = inputs["beta"]
    ret["f_l"] = jnp.mean((inputs["rgb_fine"] - targets) ** 2 / (2 * beta[:, None] ** 2))
    ret["b_l"] = 3.0 + jnp.mean(jnp.log(beta))
    ret["s_l"] = lambda_u * jnp.mean(inputs["transient_sigmas"])
    return {k: coef * v for k, v in ret.items()}


if __name__ == "__main__":
    N = 3000          # not a multiple of 1024 -> exercises sentinel padding
    N_SAMPLES = 8
    S2 = 2 * N_SAMPLES

    key = jax.random.PRNGKey(0)
    ks = jax.random.split(key, 8)
    targets = jax.random.uniform(ks[0], (N, 3), jnp.float32)
    inputs = {
        "rgb_coarse": jax.random.uniform(ks[1], (N, 3), jnp.float32),
        "rgb_fine": jax.random.uniform(ks[2], (N, 3), jnp.float32),
        "beta": jax.random.uniform(ks[3], (N,), jnp.float32, 0.1, 1.1),
        "transient_sigmas": jax.random.uniform(ks[4], (N, S2), jnp.float32),
        "render_depth": jax.random.uniform(ks[5], (N,), jnp.float32, 0.5, 4.0),
        "render_depth_var": jax.random.uniform(ks[6], (N,), jnp.float32, 0.5, 1.5),
    }
    # Depth targets: mix of valid (>0) and invalid (<=0) entries.
    depth_targets = jax.random.uniform(ks[7], (N, 1), jnp.float32, -1.0, 3.0)

    # Small tile in the test so the grid has several steps (exercises the
    # cross-step accumulation path); production default is tile_n=32768.
    loss_fn = jax.jit(make_nerfw_loss(coef=1.0, lambda_u=0.01, tile_n=1024))
    out = loss_fn(inputs, targets, depth_targets)
    out = {k: jax.block_until_ready(v) for k, v in out.items()}

    ref = nerfw_loss_ref(inputs, targets, depth_targets)
    for k in ("c_l", "f_l", "b_l", "s_l", "d_l"):
        assert jnp.allclose(out[k], ref[k], rtol=1e-4, atol=1e-5), (k, out[k], ref[k])

    print("KERNEL_OK")
</pallas_src>

<mosaic_0001>
module attributes {stable_mosaic.version = 11 : i64} {
  func.func @kernel(%arg0: i32, %arg1: memref<16x8x128xf32, #tpu.memory_space<vmem>>, %arg2: memref<16x8x128xf32, #tpu.memory_space<vmem>>, %arg3: memref<5xf32, #tpu.memory_space<smem>>, %arg4: memref<6x8x128xf32, #tpu.memory_space<vmem>>) attributes {dimension_semantics = [#tpu.dimension_semantics<arbitrary>], iteration_bounds = array<i64: 3>, scalar_prefetch = 0 : i64, scratch_operands = 1 : i64, tpu.core_type = #tpu.core_type<tc>, window_params = [{transform_indices = @transform_0, window_bounds = array<i64: 16, 8, 128>}, {transform_indices = @transform_1, window_bounds = array<i64: 16, 8, 128>}, {transform_indices = @transform_2, window_bounds = array<i64: 5>}]} {
    %c0_i32 = arith.constant 0 : i32
    %0 = arith.cmpi eq, %arg0, %c0_i32 : i32
    %1 = arith.extui %0 : i1 to i32
    %c0_i32_0 = arith.constant 0 : i32
    %2 = arith.cmpi ne, %1, %c0_i32_0 : i32
    scf.if %2 {
      %cst_57 = arith.constant 0.000000e+00 : f32
      %81 = vector.broadcast %cst_57 : f32 to vector<6x8x128xf32>
      %c0_58 = arith.constant 0 : index
      %c0_59 = arith.constant 0 : index
      %c0_60 = arith.constant 0 : index
      %82 = vector.load %arg4[%c0_58, %c0_59, %c0_60] : memref<6x8x128xf32, #tpu.memory_space<vmem>>, vector<6x8x128xf32>
      tpu.vector_store %arg4[%c0_58, %c0_59, %c0_60], %81 {strides = array<i32>} : memref<6x8x128xf32, #tpu.memory_space<vmem>>, vector<6x8x128xf32>,
    } else {
    }
    %c0 = arith.constant 0 : index
    %c0_1 = arith.constant 0 : index
    %c0_2 = arith.constant 0 : index
    %3 = vector.load %arg1[%c0, %c0_1, %c0_2] : memref<16x8x128xf32, #tpu.memory_space<vmem>>, vector<3x8x128xf32>
    %c3 = arith.constant 3 : index
    %c0_3 = arith.constant 0 : index
    %c0_4 = arith.constant 0 : index
    %4 = vector.load %arg1[%c3, %c0_3, %c0_4] : memref<16x8x128xf32, #tpu.memory_space<vmem>>, vector<3x8x128xf32>
    %c6 = arith.constant 6 : index
    %c0_5 = arith.constant 0 : index
    %c0_6 = arith.constant 0 : index
    %5 = vector.load %arg1[%c6, %c0_5, %c0_6] : memref<16x8x128xf32, #tpu.memory_space<vmem>>, vector<3x8x128xf32>
    %c9 = arith.constant 9 : index
    %c0_7 = arith.constant 0 : index
    %c0_8 = arith.constant 0 : index
    %6 = vector.load %arg1[%c9, %c0_7, %c0_8] : memref<16x8x128xf32, #tpu.memory_space<vmem>>, vector<1x8x128xf32>
    %7 = vector.shape_cast %6 : vector<1x8x128xf32> to vector<8x128xf32>
    %c10 = arith.constant 10 : index
    %c0_9 = arith.constant 0 : index
    %c0_10 = arith.constant 0 : index
    %8 = vector.load %arg1[%c10, %c0_9, %c0_10] : memref<16x8x128xf32, #tpu.memory_space<vmem>>, vector<1x8x128xf32>
    %9 = vector.shape_cast %8 : vector<1x8x128xf32> to vector<8x128xf32>
    %c11 = arith.constant 11 : index
    %c0_11 = arith.constant 0 : index
    %c0_12 = arith.constant 0 : index
    %10 = vector.load %arg1[%c11, %c0_11, %c0_12] : memref<16x8x128xf32, #tpu.memory_space<vmem>>, vector<1x8x128xf32>
    %11 = vector.shape_cast %10 : vector<1x8x128xf32> to vector<8x128xf32>
    %c12 = arith.constant 12 : index
    %c0_13 = arith.constant 0 : index
    %c0_14 = arith.constant 0 : index
    %12 = vector.load %arg1[%c12, %c0_13, %c0_14] : memref<16x8x128xf32, #tpu.memory_space<vmem>>, vector<1x8x128xf32>
    %13 = vector.shape_cast %12 : vector<1x8x128xf32> to vector<8x128xf32>
    %14 = arith.subf %3, %5 : vector<3x8x128xf32>
    %c0_15 = arith.constant 0 : index
    %c0_16 = arith.constant 0 : index
    %c0_17 = arith.constant 0 : index
    %15 = vector.load %arg4[%c0_15, %c0_16, %c0_17] : memref<6x8x128xf32, #tpu.memory_space<vmem>>, vector<1x8x128xf32>
    %16 = vector.shape_cast %15 : vector<1x8x128xf32> to vector<8x128xf32>
    %17 = arith.mulf %14, %14 : vector<3x8x128xf32>
    %cst = arith.constant dense<0.000000e+00> : vector<8x128xf32>
    %18 = vector.multi_reduction <add>, %17, %cst [0] : vector<3x8x128xf32> to vector<8x128xf32>
    %19 = arith.addf %16, %18 : vector<8x128xf32>
    %c0_18 = arith.constant 0 : index
    %c0_19 = arith.constant 0 : index
    %c0_20 = arith.constant 0 : index
    %20 = vector.load %arg4[%c0_18, %c0_19, %c0_20] : memref<6x8x128xf32, #tpu.memory_space<vmem>>, vector<1x8x128xf32>
    %21 = vector.shape_cast %20 : vector<1x8x128xf32> to vector<8x128xf32>
    %22 = vector.shape_cast %19 : vector<8x128xf32> to vector<1x8x128xf32>
    tpu.vector_store %arg4[%c0_18, %c0_19, %c0_20], %22 {strides = array<i32>} : memref<6x8x128xf32, #tpu.memory_space<vmem>>, vector<1x8x128xf32>,
    %23 = arith.mulf %7, %7 : vector<8x128xf32>
    %24 = tpu.reciprocal %23 {approx = true} : vector<8x128xf32> -> vector<8x128xf32>
    %25 = arith.mulf %23, %24 : vector<8x128xf32>
    %cst_21 = arith.constant 2.000000e+00 : f32
    %26 = vector.broadcast %cst_21 : f32 to vector<8x128xf32>
    %27 = arith.subf %26, %25 : vector<8x128xf32>
    %28 = arith.mulf %24, %27 : vector<8x128xf32>
    %29 = arith.subf %4, %5 : vector<3x8x128xf32>
    %c1 = arith.constant 1 : index
    %c0_22 = arith.constant 0 : index
    %c0_23 = arith.constant 0 : index
    %30 = vector.load %arg4[%c1, %c0_22, %c0_23] : memref<6x8x128xf32, #tpu.memory_space<vmem>>, vector<1x8x128xf32>
    %31 = vector.shape_cast %30 : vector<1x8x128xf32> to vector<8x128xf32>
    %32 = arith.mulf %29, %29 : vector<3x8x128xf32>
    %cst_24 = arith.constant dense<0.000000e+00> : vector<8x128xf32>
    %33 = vector.multi_reduction <add>, %32, %cst_24 [0] : vector<3x8x128xf32> to vector<8x128xf32>
    %cst_25 = arith.constant 5.000000e-01 : f32
    %34 = vector.broadcast %cst_25 : f32 to vector<8x128xf32>
    %35 = arith.mulf %34, %28 : vector<8x128xf32>
    %36 = arith.mulf %33, %35 : vector<8x128xf32>
    %37 = arith.addf %31, %36 : vector<8x128xf32>
    %c1_26 = arith.constant 1 : index
    %c0_27 = arith.constant 0 : index
    %c0_28 = arith.constant 0 : index
    %38 = vector.load %arg4[%c1_26, %c0_27, %c0_28] : memref<6x8x128xf32, #tpu.memory_space<vmem>>, vector<1x8x128xf32>
    %39 = vector.shape_cast %38 : vector<1x8x128xf32> to vector<8x128xf32>
    %40 = vector.shape_cast %37 : vector<8x128xf32> to vector<1x8x128xf32>
    tpu.vector_store %arg4[%c1_26, %c0_27, %c0_28], %40 {strides = array<i32>} : memref<6x8x128xf32, #tpu.memory_space<vmem>>, vector<1x8x128xf32>,
    %c2 = arith.constant 2 : index
    %c0_29 = arith.constant 0 : index
    %c0_30 = arith.constant 0 : index
    %41 = vector.load %arg4[%c2, %c0_29, %c0_30] : memref<6x8x128xf32, #tpu.memory_space<vmem>>, vector<1x8x128xf32>
    %42 = vector.shape_cast %41 : vector<1x8x128xf32> to vector<8x128xf32>
    %43 = math.log %7 : vector<8x128xf32>
    %44 = arith.addf %42, %43 : vector<8x128xf32>
    %c2_31 = arith.constant 2 : index
    %c0_32 = arith.constant 0 : index
    %c0_33 = arith.constant 0 : index
    %45 = vector.load %arg4[%c2_31, %c0_32, %c0_33] : memref<6x8x128xf32, #tpu.memory_space<vmem>>, vector<1x8x128xf32>
    %46 = vector.shape_cast %45 : vector<1x8x128xf32> to vector<8x128xf32>
    %47 = vector.shape_cast %44 : vector<8x128xf32> to vector<1x8x128xf32>
    tpu.vector_store %arg4[%c2_31, %c0_32, %c0_33], %47 {strides = array<i32>} : memref<6x8x128xf32, #tpu.memory_space<vmem>>, vector<1x8x128xf32>,
    %cst_34 = arith.constant 0.000000e+00 : f32
    %48 = vector.broadcast %cst_34 : f32 to vector<8x128xf32>
    %49 = arith.cmpf ogt, %13, %48 : vector<8x128xf32>
    %50 = arith.subf %9, %13 : vector<8x128xf32>
    %51 = math.absf %50 : vector<8x128xf32>
    %52 = math.rsqrt %11 : vector<8x128xf32>
    %53 = arith.mulf %51, %52 : vector<8x128xf32>
    %c3_35 = arith.constant 3 : index
    %c0_36 = arith.constant 0 : index
    %c0_37 = arith.constant 0 : index
    %54 = vector.load %arg4[%c3_35, %c0_36, %c0_37] : memref<6x8x128xf32, #tpu.memory_space<vmem>>, vector<1x8x128xf32>
    %55 = vector.shape_cast %54 : vector<1x8x128xf32> to vector<8x128xf32>
    %cst_38 = arith.constant 0.000000e+00 : f32
    %56 = vector.broadcast %cst_38 : f32 to vector<8x128xf32>
    %57 = arith.select %49, %53, %56 : vector<8x128xi1>, vector<8x128xf32>
    %58 = arith.addf %55, %57 : vector<8x128xf32>
    %c3_39 = arith.constant 3 : index
    %c0_40 = arith.constant 0 : index
    %c0_41 = arith.constant 0 : index
    %59 = vector.load %arg4[%c3_39, %c0_40, %c0_41] : memref<6x8x128xf32, #tpu.memory_space<vmem>>, vector<1x8x128xf32>
    %60 = vector.shape_cast %59 : vector<1x8x128xf32> to vector<8x128xf32>
    %61 = vector.shape_cast %58 : vector<8x128xf32> to vector<1x8x128xf32>
    tpu.vector_store %arg4[%c3_39, %c0_40, %c0_41], %61 {strides = array<i32>} : memref<6x8x128xf32, #tpu.memory_space<vmem>>, vector<1x8x128xf32>,
    %c4 = arith.constant 4 : index
    %c0_42 = arith.constant 0 : index
    %c0_43 = arith.constant 0 : index
    %62 = vector.load %arg4[%c4, %c0_42, %c0_43] : memref<6x8x128xf32, #tpu.memory_space<vmem>>, vector<1x8x128xf32>
    %63 = vector.shape_cast %62 : vector<1x8x128xf32> to vector<8x128xf32>
    %64 = arith.extui %49 : vector<8x128xi1> to vector<8x128xi32>
    %65 = arith.sitofp %64 : vector<8x128xi32> to vector<8x128xf32>
    %66 = arith.addf %63, %65 : vector<8x128xf32>
    %c4_44 = arith.constant 4 : index
    %c0_45 = arith.constant 0 : index
    %c0_46 = arith.constant 0 : index
    %67 = vector.load %arg4[%c4_44, %c0_45, %c0_46] : memref<6x8x128xf32, #tpu.memory_space<vmem>>, vector<1x8x128xf32>
    %68 = vector.shape_cast %67 : vector<1x8x128xf32> to vector<8x128xf32>
    %69 = vector.shape_cast %66 : vector<8x128xf32> to vector<1x8x128xf32>
    tpu.vector_store %arg4[%c4_44, %c0_45, %c0_46], %69 {strides = array<i32>} : memref<6x8x128xf32, #tpu.memory_space<vmem>>, vector<1x8x128xf32>,
    %c5 = arith.constant 5 : index
    %c0_47 = arith.constant 0 : index
    %c0_48 = arith.constant 0 : index
    %70 = vector.load %arg4[%c5, %c0_47, %c0_48] : memref<6x8x128xf32, #tpu.memory_space<vmem>>, vector<1x8x128xf32>
    %71 = vector.shape_cast %70 : vector<1x8x128xf32> to vector<8x128xf32>
    %c0_49 = arith.constant 0 : index
    %c0_50 = arith.constant 0 : index
    %c0_51 = arith.constant 0 : index
    %72 = vector.load %arg2[%c0_49, %c0_50, %c0_51] : memref<16x8x128xf32, #tpu.memory_space<vmem>>, vector<16x8x128xf32>
    %cst_52 = arith.constant dense<0.000000e+00> : vector<8x128xf32>
    %73 = vector.multi_reduction <add>, %72, %cst_52 [0] : vector<16x8x128xf32> to vector<8x128xf32>
    %74 = arith.addf %71, %73 : vector<8x128xf32>
    %c5_53 = arith.constant 5 : index
    %c0_54 = arith.constant 0 : index
    %c0_55 = arith.constant 0 : index
    %75 = vector.load %arg4[%c5_53, %c0_54, %c0_55] : memref<6x8x128xf32, #tpu.memory_space<vmem>>, vector<1x8x128xf32>
    %76 = vector.shape_cast %75 : vector<1x8x128xf32> to vector<8x128xf32>
    %77 = vector.shape_cast %74 : vector<8x128xf32> to vector<1x8x128xf32>
    tpu.vector_store %arg4[%c5_53, %c0_54, %c0_55], %77 {strides = array<i32>} : memref<6x8x128xf32, #tpu.memory_space<vmem>>, vector<1x8x128xf32>,
    %c2_i32 = arith.constant 2 : i32
    %78 = arith.cmpi eq, %arg0, %c2_i32 : i32
    %79 = arith.extui %78 : i1 to i32
    %c0_i32_56 = arith.constant 0 : i32
    %80 = arith.cmpi ne, %79, %c0_i32_56 : i32
    scf.if %80 {
      %c0_57 = arith.constant 0 : index
      %c0_58 = arith.constant 0 : index
      %c0_59 = arith.constant 0 : index
      %81 = vector.load %arg4[%c0_57, %c0_58, %c0_59] : memref<6x8x128xf32, #tpu.memory_space<vmem>>, vector<1x8x128xf32>
      %82 = vector.shape_cast %81 : vector<1x8x128xf32> to vector<8x128xf32>
      %83 = vector.shape_cast %82 : vector<8x128xf32> to vector<1x8x128xf32>
      %cst_60 = arith.constant dense<0.000000e+00> : vector<1xf32>
      %84 = vector.multi_reduction <add>, %83, %cst_60 [1, 2] : vector<1x8x128xf32> to vector<1xf32>
      %85 = vector.shape_cast %84 : vector<1xf32> to vector<1x1x1xf32>
      %86 = vector.extract %85[0, 0, 0] : f32 from vector<1x1x1xf32>
      %c1_61 = arith.constant 1 : index
      %c0_62 = arith.constant 0 : index
      %c0_63 = arith.constant 0 : index
      %87 = vector.load %arg4[%c1_61, %c0_62, %c0_63] : memref<6x8x128xf32, #tpu.memory_space<vmem>>, vector<1x8x128xf32>
      %88 = vector.shape_cast %87 : vector<1x8x128xf32> to vector<8x128xf32>
      %89 = vector.shape_cast %88 : vector<8x128xf32> to vector<1x8x128xf32>
      %cst_64 = arith.constant dense<0.000000e+00> : vector<1xf32>
      %90 = vector.multi_reduction <add>, %89, %cst_64 [1, 2] : vector<1x8x128xf32> to vector<1xf32>
      %91 = vector.shape_cast %90 : vector<1xf32> to vector<1x1x1xf32>
      %92 = vector.extract %91[0, 0, 0] : f32 from vector<1x1x1xf32>
      %c2_65 = arith.constant 2 : index
      %c0_66 = arith.constant 0 : index
      %c0_67 = arith.constant 0 : index
      %93 = vector.load %arg4[%c2_65, %c0_66, %c0_67] : memref<6x8x128xf32, #tpu.memory_space<vmem>>, vector<1x8x128xf32>
      %94 = vector.shape_cast %93 : vector<1x8x128xf32> to vector<8x128xf32>
      %95 = vector.shape_cast %94 : vector<8x128xf32> to vector<1x8x128xf32>
      %cst_68 = arith.constant dense<0.000000e+00> : vector<1xf32>
      %96 = vector.multi_reduction <add>, %95, %cst_68 [1, 2] : vector<1x8x128xf32> to vector<1xf32>
      %97 = vector.shape_cast %96 : vector<1xf32> to vector<1x1x1xf32>
      %98 = vector.extract %97[0, 0, 0] : f32 from vector<1x1x1xf32>
      %c3_69 = arith.constant 3 : index
      %c0_70 = arith.constant 0 : index
      %c0_71 = arith.constant 0 : index
      %99 = vector.load %arg4[%c3_69, %c0_70, %c0_71] : memref<6x8x128xf32, #tpu.memory_space<vmem>>, vector<1x8x128xf32>
      %100 = vector.shape_cast %99 : vector<1x8x128xf32> to vector<8x128xf32>
      %101 = vector.shape_cast %100 : vector<8x128xf32> to vector<1x8x128xf32>
      %cst_72 = arith.constant dense<0.000000e+00> : vector<1xf32>
      %102 = vector.multi_reduction <add>, %101, %cst_72 [1, 2] : vector<1x8x128xf32> to vector<1xf32>
      %103 = vector.shape_cast %102 : vector<1xf32> to vector<1x1x1xf32>
      %104 = vector.extract %103[0, 0, 0] : f32 from vector<1x1x1xf32>
      %c4_73 = arith.constant 4 : index
      %c0_74 = arith.constant 0 : index
      %c0_75 = arith.constant 0 : index
      %105 = vector.load %arg4[%c4_73, %c0_74, %c0_75] : memref<6x8x128xf32, #tpu.memory_space<vmem>>, vector<1x8x128xf32>
      %106 = vector.shape_cast %105 : vector<1x8x128xf32> to vector<8x128xf32>
      %107 = vector.shape_cast %106 : vector<8x128xf32> to vector<1x8x128xf32>
      %cst_76 = arith.constant dense<0.000000e+00> : vector<1xf32>
      %108 = vector.multi_reduction <add>, %107, %cst_76 [1, 2] : vector<1x8x128xf32> to vector<1xf32>
      %109 = vector.shape_cast %108 : vector<1xf32> to vector<1x1x1xf32>
      %110 = vector.extract %109[0, 0, 0] : f32 from vector<1x1x1xf32>
      %c5_77 = arith.constant 5 : index
      %c0_78 = arith.constant 0 : index
      %c0_79 = arith.constant 0 : index
      %111 = vector.load %arg4[%c5_77, %c0_78, %c0_79] : memref<6x8x128xf32, #tpu.memory_space<vmem>>, vector<1x8x128xf32>
      %112 = vector.shape_cast %111 : vector<1x8x128xf32> to vector<8x128xf32>
      %113 = vector.shape_cast %112 : vector<8x128xf32> to vector<1x8x128xf32>
      %cst_80 = arith.constant dense<0.000000e+00> : vector<1xf32>
      %114 = vector.multi_reduction <add>, %113, %cst_80 [1, 2] : vector<1x8x128xf32> to vector<1xf32>
      %115 = vector.shape_cast %114 : vector<1xf32> to vector<1x1x1xf32>
      %116 = vector.extract %115[0, 0, 0] : f32 from vector<1x1x1xf32>
      %cst_81 = arith.constant 5.000000e-01 : f32
      %117 = arith.mulf %cst_81, %86 : f32
      %cst_82 = arith.constant 9.000000e+03 : f32
      %118 = arith.divf %117, %cst_82 : f32
      %c0_83 = arith.constant 0 : index
      %119 = memref.load %arg3[%c0_83] : memref<5xf32, #tpu.memory_space<smem>>
      memref.store %118, %arg3[%c0_83] : memref<5xf32, #tpu.memory_space<smem>>
      %cst_84 = arith.constant 1.000000e+00 : f32
      %120 = arith.mulf %cst_84, %92 : f32
      %cst_85 = arith.constant 9.000000e+03 : f32
      %121 = arith.divf %120, %cst_85 : f32
      %c1_86 = arith.constant 1 : index
      %122 = memref.load %arg3[%c1_86] : memref<5xf32, #tpu.memory_space<smem>>
      memref.store %121, %arg3[%c1_86] : memref<5xf32, #tpu.memory_space<smem>>
      %cst_87 = arith.constant 3.000000e+03 : f32
      %123 = arith.divf %98, %cst_87 : f32
      %cst_88 = arith.constant 3.000000e+00 : f32
      %124 = arith.addf %cst_88, %123 : f32
      %cst_89 = arith.constant 1.000000e+00 : f32
      %125 = arith.mulf %cst_89, %124 : f32
      %c2_90 = arith.constant 2 : index
      %126 = memref.load %arg3[%c2_90] : memref<5xf32, #tpu.memory_space<smem>>
      memref.store %125, %arg3[%c2_90] : memref<5xf32, #tpu.memory_space<smem>>
      %cst_91 = arith.constant 0.00999999977 : f32
      %127 = arith.mulf %cst_91, %116 : f32
      %cst_92 = arith.constant 4.800000e+04 : f32
      %128 = arith.divf %127, %cst_92 : f32
      %c3_93 = arith.constant 3 : index
      %129 = memref.load %arg3[%c3_93] : memref<5xf32, #tpu.memory_space<smem>>
      memref.store %128, %arg3[%c3_93] : memref<5xf32, #tpu.memory_space<smem>>
      %cst_94 = arith.constant 9.000000e-02 : f32
      %130 = arith.mulf %cst_94, %104 : f32
      %131 = arith.divf %130, %110 : f32
      %c4_95 = arith.constant 4 : index
      %132 = memref.load %arg3[%c4_95] : memref<5xf32, #tpu.memory_space<smem>>
      memref.store %131, %arg3[%c4_95] : memref<5xf32, #tpu.memory_space<smem>>
    } else {
    }
    return
  }
  func.func @transform_0(%arg0: i32) -> (i32, i32, i32) {
    %c0_i32 = arith.constant 0 : i32
    %c0_i32_0 = arith.constant 0 : i32
    %c0_i32_1 = arith.constant 0 : i32
    return %c0_i32, %c0_i32_0, %arg0 : i32, i32, i32
  }
  func.func @transform_1(%arg0: i32) -> (i32, i32, i32) {
    %c0_i32 = arith.constant 0 : i32
    %c0_i32_0 = arith.constant 0 : i32
    %c0_i32_1 = arith.constant 0 : i32
    return %c0_i32, %c0_i32_0, %arg0 : i32, i32, i32
  }
  func.func @transform_2(%arg0: i32) -> i32 {
    %c0_i32 = arith.constant 0 : i32
    %c0_i32_0 = arith.constant 0 : i32
    return %c0_i32 : i32
  }
}

</mosaic_0001>

<bundles_post_ra>
// kernel: nerfw_loss.1
= control target key start
LH: loop header
LB: loop body
LE: loop exit
PB: predicated region body
PF: predicated region fallthrough
CT: control target
= control target key end

     0   :  { %7 = vsyncpa [#allocation6], 0  ;;  %s761_s9 = smov 0   ;;  %s763_s10 = smov 0   ;;  %s908_s0 = inlined_call_operand.vmem [shape: f32[16,8,384], index: 0, kind: input, shape index: {}]   ;;  %s909_s1 = inlined_call_operand.vmem [shape: f32[16,8,384], index: 1, kind: input, shape index: {}]   ;;  %s910_s2 = inlined_call_operand.vmem [shape: f32[5], index: 2, kind: output, shape index: {}]  }
   0x1   :  { %s765_s11 = smov 0  }
   0x2 LB: > { %s777_s12 = sadd.s32 4294967295, %s741_s11   ;;  %s780_s13 = sadd.s32 1, %s741_s11   ;;  %s741_s11 = sphi %s765_s11, %s914_s11   ;;  %s737_s10 = sphi %s763_s10, %s913_s10   ;;  %s733_s9 = sphi %s761_s9, %s912_s9  }
   0x3   : > { %s17_s14 = ssub.s32 %s741_s11, %s780_s13  ;;  %s20_s15 = sadd.s32 1, %s737_s10 }
   0x4   : > { %p18_p0 = scmp.eq.s32.totalorder %s17_s14, 0  ;;  %p27_p1 = scmp.ne.s32.totalorder %s737_s10, %s733_s9 }
   0x5   : > { %p28_p2 = scmp.eq.s32.totalorder %s741_s11, 0  ;;  %p621_p4 = scmp.ge.s32.totalorder %s741_s11, 3 }
   0x6   : > { %s789_s16 = scalar_select %p18_p0, %s737_s10, %s20_s15  }
   0x7   : > { %p791_p3 = por %p28_p2, %p27_p1  ;;  %100 = sbr.rel (%p621_p4) target bundleno = 38 (0x26), region = 16 }
   0xe   : > { %103 = sbr.rel (!%p791_p3) target bundleno = 26 (0x1a), region = 20  ;;  %s105_s18 = sand.u32 (%p791_p3), 1, %s737_s10  }
   0xf   : > { %s623_s19 = sshll.u32 (%p791_p3), %s741_s11, 3  ;;  %s622_s20 = sshll.u32 (%p791_p3), %s105_s18, 7 }
  0x10   : > { %s803_s23 = scalar_lea.vmem (%p791_p3), %s908_s0, %s623_s19  ;;  %s107_s24 = scalar_lea.vmem (%p791_p3), [#allocation3], %s622_s20 }
  0x11   : > { %v167_v0 = vld [vmem:[%s803_s23] sm:$0xff] (%p791_p3)  ;;  %v169_v1 = vld [vmem:[%s803_s23 + $0x18] sm:$0xff] (%p791_p3)  ;;  %v171_v2 = vld [vmem:[%s803_s23 + $0x30] sm:$0xff] (%p791_p3) }
  0x12   : > { %168 = vst [vmem:[%s107_s24] sm:$0xff] (%p791_p3), %v167_v0  ;;  %170 = vst [vmem:[%s107_s24 + $0x8] sm:$0xff] (%p791_p3), %v169_v1  ;;  %v173_v3 = vld [vmem:[%s803_s23 + $0x48] sm:$0xff] (%p791_p3)  ;;  %v175_v4 = vld [vmem:[%s803_s23 + $0x60] sm:$0xff] (%p791_p3) }
  0x13   : > { %172 = vst [vmem:[%s107_s24 + $0x10] sm:$0xff] (%p791_p3), %v171_v2  ;;  %v177_v5 = vld [vmem:[%s803_s23 + $0x78] sm:$0xff] (%p791_p3)  ;;  %174 = vst [vmem:[%s107_s24 + $0x18] sm:$0xff] (%p791_p3), %v173_v3  ;;  %v179_v6 = vld [vmem:[%s803_s23 + $0x90] sm:$0xff] (%p791_p3) }
  0x14   : > { %176 = vst [vmem:[%s107_s24 + $0x20] sm:$0xff] (%p791_p3), %v175_v4  ;;  %178 = vst [vmem:[%s107_s24 + $0x28] sm:$0xff] (%p791_p3), %v177_v5  ;;  %v181_v7 = vld [vmem:[%s803_s23 + $0xa8] sm:$0xff] (%p791_p3)  ;;  %v183_v8 = vld [vmem:[%s803_s23 + $0xc0] sm:$0xff] (%p791_p3) }
  0x15   : > { %180 = vst [vmem:[%s107_s24 + $0x30] sm:$0xff] %v179_v6  ;;  %182 = vst [vmem:[%s107_s24 + $0x38] sm:$0xff] %v181_v7  ;;  %v185_v9 = vld [vmem:[%s803_s23 + $0xd8] sm:$0xff]  ;;  %v187_v10 = vld [vmem:[%s803_s23 + $0xf0] sm:$0xff] }
  0x16   : > { %184 = vst [vmem:[%s107_s24 + $0x40] sm:$0xff] %v183_v8  ;;  %v189_v11 = vld [vmem:[%s803_s23 + $0x108] sm:$0xff]  ;;  %186 = vst [vmem:[%s107_s24 + $0x48] sm:$0xff] %v185_v9  ;;  %v191_v12 = vld [vmem:[%s803_s23 + $0x120] sm:$0xff] }
  0x17   : > { %188 = vst [vmem:[%s107_s24 + $0x50] sm:$0xff] %v187_v10  ;;  %190 = vst [vmem:[%s107_s24 + $0x58] sm:$0xff] %v189_v11  ;;  %v193_v13 = vld [vmem:[%s803_s23 + $0x138] sm:$0xff]  ;;  %v195_v14 = vld [vmem:[%s803_s23 + $0x150] sm:$0xff] }
  0x18   : > { %192 = vst [vmem:[%s107_s24 + $0x60] sm:$0xff] %v191_v12  ;;  %194 = vst [vmem:[%s107_s24 + $0x68] sm:$0xff] %v193_v13  ;;  %v197_v15 = vld [vmem:[%s803_s23 + $0x168] sm:$0xff] }
  0x19   : > { %196 = vst [vmem:[%s107_s24 + $0x70] sm:$0xff] %v195_v14  ;;  %198 = vst [vmem:[%s107_s24 + $0x78] sm:$0xff] %v197_v15 }
  0x1a PF: > { %204 = sbr.rel (!%p791_p3) target bundleno = 38 (0x26), region = 58  ;;  %s206_s25 = sand.u32 (%p791_p3), 1, %s737_s10  }
  0x1b   : > { %s625_s26 = sshll.u32 (%p791_p3), %s741_s11, 3  ;;  %s624_s27 = sshll.u32 (%p791_p3), %s206_s25, 7 }
  0x1c   : > { %s828_s30 = scalar_lea.vmem (%p791_p3), %s909_s1, %s625_s26  ;;  %s208_s3 = scalar_lea.vmem (%p791_p3), [#allocation4], %s624_s27 }
  0x1d   : > { %v268_v16 = vld [vmem:[%s828_s30] sm:$0xff] (%p791_p3)  ;;  %v270_v17 = vld [vmem:[%s828_s30 + $0x18] sm:$0xff] (%p791_p3)  ;;  %v272_v18 = vld [vmem:[%s828_s30 + $0x30] sm:$0xff] (%p791_p3) }
  0x1e   : > { %269 = vst [vmem:[%s208_s3] sm:$0xff] (%p791_p3), %v268_v16  ;;  %271 = vst [vmem:[%s208_s3 + $0x8] sm:$0xff] (%p791_p3), %v270_v17  ;;  %v274_v19 = vld [vmem:[%s828_s30 + $0x48] sm:$0xff] (%p791_p3)  ;;  %v276_v20 = vld [vmem:[%s828_s30 + $0x60] sm:$0xff] (%p791_p3) }
  0x1f   : > { %273 = vst [vmem:[%s208_s3 + $0x10] sm:$0xff] (%p791_p3), %v272_v18  ;;  %v278_v21 = vld [vmem:[%s828_s30 + $0x78] sm:$0xff] (%p791_p3)  ;;  %275 = vst [vmem:[%s208_s3 + $0x18] sm:$0xff] (%p791_p3), %v274_v19  ;;  %v280_v22 = vld [vmem:[%s828_s30 + $0x90] sm:$0xff] (%p791_p3) }
  0x20   : > { %277 = vst [vmem:[%s208_s3 + $0x20] sm:$0xff] (%p791_p3), %v276_v20  ;;  %279 = vst [vmem:[%s208_s3 + $0x28] sm:$0xff] (%p791_p3), %v278_v21  ;;  %v282_v23 = vld [vmem:[%s828_s30 + $0xa8] sm:$0xff] (%p791_p3)  ;;  %v284_v24 = vld [vmem:[%s828_s30 + $0xc0] sm:$0xff] (%p791_p3) }
  0x21   : > { %281 = vst [vmem:[%s208_s3 + $0x30] sm:$0xff] %v280_v22  ;;  %283 = vst [vmem:[%s208_s3 + $0x38] sm:$0xff] %v282_v23  ;;  %v286_v25 = vld [vmem:[%s828_s30 + $0xd8] sm:$0xff]  ;;  %v288_v26 = vld [vmem:[%s828_s30 + $0xf0] sm:$0xff] }
  0x22   : > { %285 = vst [vmem:[%s208_s3 + $0x40] sm:$0xff] %v284_v24  ;;  %v290_v27 = vld [vmem:[%s828_s30 + $0x108] sm:$0xff]  ;;  %287 = vst [vmem:[%s208_s3 + $0x48] sm:$0xff] %v286_v25  ;;  %v292_v28 = vld [vmem:[%s828_s30 + $0x120] sm:$0xff] }
  0x23   : > { %289 = vst [vmem:[%s208_s3 + $0x50] sm:$0xff] %v288_v26  ;;  %291 = vst [vmem:[%s208_s3 + $0x58] sm:$0xff] %v290_v27  ;;  %v294_v29 = vld [vmem:[%s828_s30 + $0x138] sm:$0xff]  ;;  %v296_v30 = vld [vmem:[%s828_s30 + $0x150] sm:$0xff] }
  0x24   : > { %293 = vst [vmem:[%s208_s3 + $0x60] sm:$0xff] %v292_v28  ;;  %295 = vst [vmem:[%s208_s3 + $0x68] sm:$0xff] %v294_v29  ;;  %v298_v31 = vld [vmem:[%s828_s30 + $0x168] sm:$0xff] }
  0x25   : > { %297 = vst [vmem:[%s208_s3 + $0x70] sm:$0xff] %v296_v30  ;;  %299 = vst [vmem:[%s208_s3 + $0x78] sm:$0xff] %v298_v31 }
  0x26 PF: > { %p626_p5 = scmp.ge.s32.totalorder %s741_s11, 1  ;;  %p304_p6 = scmp.lt.s32.totalorder %s741_s11, 4 }
  0x28   : > { %p305_p7 = pnand %p626_p5, %p304_p6 }
  0x29   : > { %s311_s4 = sand.u32 (!%p305_p7), 1, %s733_s9   ;;  %p629_p8 = scmp.ne.s32.totalorder (!%p305_p7), %s777_s12, 0 }
  0x2a   : > { %308 = sbr.rel (%p305_p7) target bundleno = 381 (0x17d), region = 96  ;;  %s627_s5 = sshll.u32 (!%p305_p7), %s311_s4, 7 }
  0x2b   : > { %s849_s6 = scalar_lea.vmem (!%p305_p7), [#allocation3], %s627_s5  ;;  %s851_s7 = scalar_lea.vmem (!%p305_p7), [#allocation4], %s627_s5 }
  0x31   : > { %341 = sbr.rel (%p629_p8) target bundleno = 56 (0x38), region = 108  ;;  %v743_v32 = vmov (!%p629_p8), 0.0  }
  0x32   : > { %342 = vst [vmem:[#allocation2] sm:$0xff] (!%p629_p8), %v743_v32  ;;  %343 = vst [vmem:[#allocation2 + $0x8] sm:$0xff] (!%p629_p8), %v743_v32 }
  0x33   : > { %344 = vst [vmem:[#allocation2 + $0x10] sm:$0xff] (!%p629_p8), %v743_v32  ;;  %345 = vst [vmem:[#allocation2 + $0x18] sm:$0xff] (!%p629_p8), %v743_v32 }
  0x34   : > { %346 = vst [vmem:[#allocation2 + $0x20] sm:$0xff] (!%p629_p8), %v743_v32  ;;  %347 = vst [vmem:[#allocation2 + $0x28] sm:$0xff] (!%p629_p8), %v743_v32 }
  0x38 PF: > { %v348_v33 = vld [vmem:[%s849_s6] sm:$0xff]  ;;  %v349_v34 = vld [vmem:[%s849_s6 + $0x8] sm:$0xff]  ;;  %v350_v35 = vld [vmem:[%s849_s6 + $0x10] sm:$0xff]  ;;  %v744_v57 = vmov 0.0   ;;  %p641_p9 = scmp.ne.s32.totalorder %s777_s12, 2 }
  0x39   : > { %v633_v36 = vld [vmem:[%s849_s6 + $0x30] sm:$0xff]  ;;  %v634_v37 = vld [vmem:[%s849_s6 + $0x38] sm:$0xff]  ;;  %v635_v38 = vld [vmem:[%s849_s6 + $0x40] sm:$0xff] }
  0x3a   : > { %v367_v39 = vsub.f32 %v348_v33, %v633_v36  ;;  %v368_v40 = vsub.f32 %v349_v34, %v634_v37  ;;  %v369_v41 = vsub.f32 %v350_v35, %v635_v38  ;;  %v636_v42 = vld [vmem:[%s849_s6 + $0x48] sm:$0xff]  ;;  %v638_v47 = vld [vmem:[%s849_s6 + $0x58] sm:$0xff]  ;;  %v639_v49 = vld [vmem:[%s849_s6 + $0x60] sm:$0xff] }
  0x3b   : > { %v378_v46 = vmul.f32 %v636_v42, %v636_v42  ;;  %v630_v48 = vld [vmem:[%s849_s6 + $0x18] sm:$0xff]  ;;  %693 = vlog2.f32 %v636_v42  ;;  %v414_v50 = vld [vmem:[#allocation2 + $0x20] sm:$0xff]  ;;  %v631_v52 = vld [vmem:[%s849_s6 + $0x20] sm:$0xff]  ;;  %vm403_vm0 = vcmp.gt.f32.partialorder %v639_v49, 0.0 }
  0x3c   : > { %v371_v43 = vmul.f32 %v367_v39, %v367_v39  ;;  %v372_v44 = vmul.f32 %v368_v40, %v368_v40  ;;  %v373_v45 = vmul.f32 %v369_v41, %v369_v41  ;;  %v421_v53 = vld [vmem:[%s851_s7] sm:$0xff]  ;;  %v422_v54 = vld [vmem:[%s851_s7 + $0x8] sm:$0xff]  ;;  %v370_v55 = vld [vmem:[#allocation2] sm:$0xff]  ;;  %v640_v58 = vsel %vm403_vm0, 1.0, %v744_v57 }
  0x3d   : > { %695 = vrcp.f32 %v378_v46  ;;  %v637_v56 = vld [vmem:[%s849_s6 + $0x50] sm:$0xff]  ;;  %v417_v61 = vadd.f32 %v640_v58, %v414_v50  ;;  %v437_v62 = vadd.f32 %v422_v54, %v421_v53  ;;  %v383_v63 = vsub.f32 %v630_v48, %v633_v36  ;;  %v424_v1 = vld [vmem:[%s851_s7 + $0x18] sm:$0xff]  ;;  %v632_v3 = vld [vmem:[%s849_s6 + $0x28] sm:$0xff] }
  0x3e   : > { %v374_v51 = vadd.f32 %v372_v44, %v371_v43  ;;  %697 = vrsqrt.f32 %v638_v47  ;;  %v423_v59 = vld [vmem:[%s851_s7 + $0x10] sm:$0xff]  ;;  %v384_v0 = vsub.f32 %v631_v52, %v634_v37  ;;  %v404_v4 = vsub.f32 %v637_v56, %v639_v49  ;;  %v425_v6 = vld [vmem:[%s851_s7 + $0x20] sm:$0xff]  ;;  %v426_v11 = vld [vmem:[%s851_s7 + $0x28] sm:$0xff] }
  0x3f   : > { %418 = vst [vmem:[#allocation2 + $0x20] sm:$0xff] %v417_v61  ;;  %v438_v5 = vadd.f32 %v437_v62, %v423_v59  ;;  %v385_v8 = vsub.f32 %v632_v3, %v635_v38  ;;  %v388_v9 = vmul.f32 %v383_v63, %v383_v63  ;;  %v398_v15 = vld [vmem:[#allocation2 + $0x10] sm:$0xff]  ;;  %v427_v16 = vld [vmem:[%s851_s7 + $0x30] sm:$0xff]  ;;  %v428_v24 = vld [vmem:[%s851_s7 + $0x38] sm:$0xff] }
  0x40   : > { %v375_v60 = vadd.f32 %v374_v51, %v373_v45  ;;  %v389_v10 = vmul.f32 %v384_v0, %v384_v0  ;;  %v405_v12 = vand.u32 2147483647, %v404_v4  ;;  %v409_v27 = vld [vmem:[#allocation2 + $0x18] sm:$0xff]  ;;  %v429_v30 = vld [vmem:[%s851_s7 + $0x40] sm:$0xff]  ;;  %v431_v39 = vld [vmem:[%s851_s7 + $0x50] sm:$0xff] }
  0x41   : > { %v439_v7 = vadd.f32 %v438_v5, %v424_v1  ;;  %v390_v22 = vmul.f32 %v385_v8, %v385_v8  ;;  %v430_v36 = vld [vmem:[%s851_s7 + $0x48] sm:$0xff]  ;;  %v387_v40 = vld [vmem:[#allocation2 + $0x8] sm:$0xff]  ;;  %v435_v50 = vld [vmem:[%s851_s7 + $0x70] sm:$0xff] }
  0x42   : > { %v376_v2 = vadd.f32 %v375_v60, %v370_v55  ;;  %v391_v23 = vadd.f32 %v389_v10, %v388_v9  ;;  %v432_v43 = vld [vmem:[%s851_s7 + $0x58] sm:$0xff]  ;;  %v434_v48 = vld [vmem:[%s851_s7 + $0x68] sm:$0xff] }
  0x43   : > { %v440_v13 = vadd.f32 %v439_v7, %v425_v6  ;;  %v436_v52 = vld [vmem:[%s851_s7 + $0x78] sm:$0xff] }
  0x44   : > { %377 = vst [vmem:[#allocation2] sm:$0xff] %v376_v2  ;;  %v392_v34 = vadd.f32 %v391_v23, %v390_v22  ;;  %v420_v54 = vld [vmem:[#allocation2 + $0x28] sm:$0xff] }
  0x45   : > { %v694_v14 = vpop.eup %693  ;;  %v441_v19 = vadd.f32 %v440_v13, %v426_v11 }
  0x46   : > { %v400_v18 = vmul.f32 0.6931472, %v694_v14  ;;  %v498_v61 = vld [vmem:[#allocation2 + $0x20] sm:$0xff] (!%p641_p9) }
  0x47   : > { %v696_v17 = vpop.eup %695  ;;  %v442_v28 = vadd.f32 %v441_v19, %v427_v16 }
  0x48   : > { %v698_v20 = vpop.eup %697  ;;  %v380_v21 = vmul.f32 %v696_v17, %v378_v46  ;;  %v401_v25 = vadd.f32 %v400_v18, %v398_v15  ;;  %v433_v46 = vld [vmem:[%s851_s7 + $0x60] sm:$0xff] }
  0x49   : > { %v407_v26 = vmul.f32 %v698_v20, %v405_v12  ;;  %v443_v32 = vadd.f32 %v442_v28, %v428_v24 }
  0x4a   : > { %v381_v29 = vsub.f32 2.0, %v380_v21  ;;  %402 = vst [vmem:[#allocation2 + $0x10] sm:$0xff] %v401_v25 }
  0x4b   : > { %v410_v31 = vsel %vm403_vm0, %v407_v26, 0.0  ;;  %v444_v37 = vadd.f32 %v443_v32, %v429_v30  ;;  %v458_v58 = vld [vmem:[#allocation2] sm:$0xff] (!%p641_p9) }
  0x4c   : > { %v382_v33 = vmul.f32 %v696_v17, %v381_v29  ;;  %v411_v35 = vadd.f32 %v410_v31, %v409_v27  ;;  %459 = vadd.xlane.f32.xlu0 (!%p641_p9), %v458_v58 }
  0x4d   : > { %v445_v41 = vadd.f32 %v444_v37, %v430_v36 }
  0x4e   : > { %v393_v38 = vmul.f32 0.5, %v382_v33  ;;  %412 = vst [vmem:[#allocation2 + $0x18] sm:$0xff] %v411_v35 }
  0x4f   : > { %v446_v44 = vadd.f32 %v445_v41, %v431_v39 }
  0x50   : > { %v394_v42 = vmul.f32 %v393_v38, %v392_v34 }
  0x51   : > { %v447_v47 = vadd.f32 %v446_v44, %v432_v43  ;;  %v478_v57 = vld [vmem:[#allocation2 + $0x10] sm:$0xff] (!%p641_p9) }
  0x52   : > { %v395_v45 = vadd.f32 %v394_v42, %v387_v40  ;;  %479 = vadd.xlane.f32.xlu1 (!%p641_p9), %v478_v57 }
  0x53   : > { %v448_v49 = vadd.f32 %v447_v47, %v433_v46 }
  0x54   : > { %396 = vst [vmem:[#allocation2 + $0x8] sm:$0xff] %v395_v45 }
  0x55   : > { %v449_v51 = vadd.f32 %v448_v49, %v434_v48  ;;  %v488_v59 = vld [vmem:[#allocation2 + $0x18] sm:$0xff] (!%p641_p9) }
  0x56   : > { %489 = vadd.xlane.f32.xlu1 (!%p641_p9), %v488_v59 }
  0x57   : > { %v450_v53 = vadd.f32 %v449_v51, %v435_v50  ;;  %457 = sbr.rel (%p641_p9) target bundleno = 365 (0x16d), region = 112 }
  0x59   : > { %v451_v55 = vadd.f32 %v450_v53, %v436_v52 }
  0x5b   : > { %v452_v56 = vadd.f32 %v451_v55, %v420_v54  ;;  %v468_v60 = vld [vmem:[#allocation2 + $0x8] sm:$0xff] (!%p641_p9) }
  0x5c   : > { %469 = vadd.xlane.f32.xlu0 (!%p641_p9), %v468_v60 }
  0x5d   : > { %453 = vst [vmem:[#allocation2 + $0x28] sm:$0xff] %v452_v56 }
  0x60   : > { %499 = vadd.xlane.f32.xlu0 %v498_v61 }
  0x64   : > { %v508_v62 = vld [vmem:[#allocation2 + $0x28] sm:$0xff] }
  0x65   : > { %509 = vadd.xlane.f32.xlu1 %v508_v62 }
  0xd9   : > { %v460_v0 = vpop.xlane.xlu0 %459 }
  0xda   : > { %v461_v2 = vrot.slane %v460_v0, 4 }
  0xdc   : > { %v462_v4 = vadd.f32 %v461_v2, %v460_v0 }
  0xde   : > { %v463_v8 = vrot.slane %v462_v4, 2 }
  0xdf   : > { %v480_v63 = vpop.xlane.xlu1 %479 }
  0xe0   : > { %v481_v1 = vrot.slane %v480_v63, 4  ;;  %v464_v13 = vadd.f32 %v463_v8, %v462_v4 }
  0xe2   : > { %v482_v3 = vadd.f32 %v481_v1, %v480_v63  ;;  %v465_v20 = vrot.slane %v464_v13, 1 }
  0xe3   : > { %v490_v5 = vpop.xlane.xlu1 %489 }
  0xe4   : > { %v483_v7 = vrot.slane %v482_v3, 2  ;;  %v491_v9 = vrot.slane %v490_v5, 4  ;;  %v466_v23 = vadd.f32 %v465_v20, %v464_v13 }
  0xe6   : > { %v492_v11 = vadd.f32 %v491_v9, %v490_v5  ;;  %v484_v15 = vadd.f32 %v483_v7, %v482_v3  ;;  %646 = vpush %v466_v23 }
  0xe8   : > { %v493_v17 = vrot.slane %v492_v11, 2  ;;  %v485_v26 = vrot.slane %v484_v15, 1 }
  0xe9   : > { %v470_v6 = vpop.xlane.xlu0 %469 }
  0xea   : > { %v471_v10 = vrot.slane %v470_v6, 4  ;;  %v494_v25 = vadd.f32 %v493_v17, %v492_v11  ;;  %v486_v35 = vadd.f32 %v485_v26, %v484_v15 }
  0xec   : > { %v472_v12 = vadd.f32 %v471_v10, %v470_v6  ;;  %v495_v30 = vrot.slane %v494_v25, 1 }
  0xed   : > { %v500_v14 = vpop.xlane.xlu0 %499 }
  0xee   : > { %v473_v18 = vrot.slane %v472_v12, 2  ;;  %v501_v19 = vrot.slane %v500_v14, 4  ;;  %v496_v34 = vadd.f32 %v495_v30, %v494_v25 }
  0xf0   : > { %v502_v22 = vadd.f32 %v501_v19, %v500_v14  ;;  %v474_v24 = vadd.f32 %v473_v18, %v472_v12 }
  0xf2   : > { %v510_v16 = vpop.xlane.xlu1 %509  ;;  %v503_v28 = vrot.slane %v502_v22, 2  ;;  %v475_v29 = vrot.slane %v474_v24, 1 }
  0xf3   : > { %v511_v21 = vrot.slane %v510_v16, 4 }
  0xf4   : > { %v504_v32 = vadd.f32 %v503_v28, %v502_v22  ;;  %v476_v33 = vadd.f32 %v475_v29, %v474_v24 }
  0xf5   : > { %v512_v27 = vadd.f32 %v511_v21, %v510_v16 }
  0xf6   : > { %648 = vpush %v476_v33  ;;  %v505_v37 = vrot.slane %v504_v32, 1 }
  0xf7   : > { %v513_v31 = vrot.slane %v512_v27, 2  ;;  %650 = vpush %v486_v35 }
  0xf8   : > { %652 = vpush %v496_v34  ;;  %v506_v39 = vadd.f32 %v505_v37, %v504_v32 }
  0xf9   : > { %v514_v36 = vadd.f32 %v513_v31, %v512_v27 }
  0xfa   : > { %654 = vpush %v506_v39 }
  0xfb   : > { %v515_v38 = vrot.slane %v514_v36, 1 }
  0xfd   : > { %v516_v40 = vadd.f32 %v515_v38, %v514_v36 }
  0xff   : > { %656 = vpush %v516_v40 }
 0x117   : > { %s647_s8 = spop %646 }
 0x118   : > { %s518_s9 = smul.f32 0.5, %s647_s8 }
 0x11a   : > { %s521_s11 = smul.f32 0.00011111111, %s518_s9 }
 0x11c   : > { %523 = sst [smem:[#allocation5]] %s521_s11 }
 0x127   : > { %s649_s14 = spop %648 }
 0x128   : > { %s526_s15 = smul.f32 0.00011111111, %s649_s14  ;;  %s651_s17 = spop %650 }
 0x129   : > { %s531_s18 = smul.f32 0.00033333333, %s651_s17  ;;  %s653_s20 = spop %652 }
 0x12a   : > { %528 = sst [smem:[#allocation5 + $0x1]] %s526_s15  ;;  %s541_s25 = smul.f32 0.09, %s653_s20 }
 0x12b   : > { %s532_s19 = sadd.f32 3.0, %s531_s18  ;;  %s655_s21 = spop %654 }
 0x12c   : > { %v542_v41 = vstv %s655_s21 }
 0x12d   : > { %534 = sst [smem:[#allocation5 + $0x2]] %s532_s19  ;;  %699 = vrcp.f32 %v542_v41 }
 0x130   : > { %s657_s22 = spop %656 }
 0x131   : > { %s535_s23 = smul.f32 0.01, %s657_s22 }
 0x133   : > { %s538_s24 = smul.f32 2.0833333e-05, %s535_s23 }
 0x135   : > { %540 = sst [smem:[#allocation5 + $0x3]] %s538_s24 }
 0x137   : > { %v700_v42 = vpop.eup %699 }
 0x138   : > { %658 = vpush %v700_v42 }
 0x169   : > { %s659_s26 = spop %658 }
 0x16a   : > { %s545_s27 = smul.f32 %s659_s26, %s541_s25 }
 0x16c   : > { %547 = sst [smem:[#allocation5 + $0x4]] %s545_s27 }
 0x16d PF: > { %p664_p10 = scmp.eq.s32.totalorder %s777_s12, 2  ;;  %s555_s30 = sshll.u32 %s910_s2, 4  ;;  %s556_s30 = int_to_ptr.vmem [resolvable:$true] %s555_s30 }
 0x16e   : > { %s701_s3 = scalar_lea.vmem %s556_s30, 16  ;;  %p708_p0 = scmp.lt.s32.totalorder %s556_s30, %s556_s30 }
 0x16f   : > { %p702_p11 = scmp.ne.s32.totalorder %s556_s30, %s701_s3  ;;  %p709_p1 = scmp.lt.s32.totalorder %s701_s3, %s701_s3 }
 0x171   : > { %p703_p12 = pnand %p702_p11, %p664_p10  ;;  %p710_p2 = por %p709_p1, %p708_p0 }
 0x173   : > { %p704_p13 = pneg %p703_p12 }
 0x175   : > { %p711_p3 = pnand %p710_p2, %p704_p13 }
 0x177   : > { %714 = shalt.err (!%p711_p3)
}
 0x178   : > { %s745_s4 = smov [#allocation5]  }
 0x179   : > { %661 = dma.smem_to_vmem (%p664_p10), %s745_s4, 16, %s556_s30, [#allocation6]  }
 0x17a   : > { %728 = dma.done.wait (%p664_p10), [#allocation6], 16  }
 0x17b   : > { %730 = vsyncadd (%p664_p10), [#allocation6], 4294967280 }
 0x17c   : > { %563 = sfence }
 0x17d PF: > { %p10_p4 = scmp.ge.s32.totalorder %s780_s13, 5   ;;  %s912_s9 = smov %s737_s10 }
 0x17e   : > { %s913_s10 = smov %s789_s16  ;;  %s914_s11 = smov %s780_s13 }
 0x17f   :  { %12 = sbr.rel (!%p10_p4) target bundleno = 2 (0x2), region = 168 }
 0x186   :  { %569 = vsyncpa [#allocation6], 1 }
 0x187   :  { %571 = vsyncpa [#allocation6 + $0x1], 1 }

</bundles_post_ra>
